<compile_context>
chip_gen: v7x
topology: tpu7x:2x2x1
jax: 0.10.0
libtpu: 0.0.40
codegen_flags: <defaults>
</compile_context>

<pallas_src>
import math
import functools

import jax
import jax.numpy as jnp
from jax import lax
from jax.experimental import pallas as pl
from jax.experimental.pallas import tpu as pltpu


# ----------------------------------------------------------------------------
# Kernel 1: fused Linear + ReLU projections  (y_g = relu(x_g @ W_g + b_g))
# All streams (Q / K / V) share one grid; weights/biases are resident blocks.
# ----------------------------------------------------------------------------
def _proj_relu_kernel(*refs, n_streams):
    xs = refs[:n_streams]
    ws = refs[n_streams:2 * n_streams]
    bs = refs[2 * n_streams:3 * n_streams]
    outs = refs[3 * n_streams:]
    for x_ref, w_ref, b_ref, o_ref in zip(xs, ws, bs, outs):
        x = x_ref[...].astype(w_ref.dtype)            # MXU operands in compute dtype
        y = jnp.dot(x, w_ref[...], preferred_element_type=jnp.float32)
        y = y + b_ref[...]                            # f32 bias add, f32 ReLU
        o_ref[...] = jnp.maximum(y, 0.0).astype(o_ref.dtype)


def fused_linear_relu(xs, ws, bs, out_dtype, *, row_block=256, vmem_limit_bytes=None):
    """xs: list of (N, D) inputs (same N); ws: list of (D, D); bs: list of (1, D)."""
    n_streams = len(xs)
    N, D = xs[0].shape
    TM = N if N <= row_block else row_block           # full dim (always legal) or 8-aligned tile
    grid = (pl.cdiv(N, TM),)

    kernel = functools.partial(_proj_relu_kernel, n_streams=n_streams)
    in_specs = (
        [pl.BlockSpec((TM, D), lambda i: (i, 0)) for _ in range(n_streams)]
        + [pl.BlockSpec((D, D), lambda i: (0, 0)) for _ in range(n_streams)]
        + [pl.BlockSpec((1, D), lambda i: (0, 0)) for _ in range(n_streams)]
    )
    out_specs = tuple(pl.BlockSpec((TM, D), lambda i: (i, 0)) for _ in range(n_streams))
    out_shape = tuple(jax.ShapeDtypeStruct((N, D), out_dtype) for _ in xs)

    outs = pl.pallas_call(
        kernel,
        grid=grid,
        in_specs=in_specs,
        out_specs=out_specs,
        out_shape=out_shape,
        compiler_params=pltpu.CompilerParams(
            dimension_semantics=("parallel",),
            vmem_limit_bytes=vmem_limit_bytes),
    )(*xs, *ws, *bs)
    if not isinstance(outs, (list, tuple)):
        outs = (outs,)
    return tuple(outs)


# ----------------------------------------------------------------------------
# Kernel 2: per-batch multi-head attention, heads batched in one dot_general.
#   s        = (Qh @ Kh^T) / sqrt(dh)                (H, TQ, Tk), f32 acc
#   score    = s * query_mask                        (stored; == module's attn_score)
#   probs    = softmax(s, -1) * query_mask           (dropout p=0 -> identity)
#   out[b,h] = probs[h] @ Vh
# ----------------------------------------------------------------------------
def _attn_fwd_kernel(q_ref, k_ref, v_ref, m_ref, out_ref, score_ref,
                     *, scale, approx_recip):
    q = q_ref[0]                       # (H, TQ, dh)  compute dtype
    k = k_ref[0]                       # (H, Tk, dh)
    v = v_ref[0]                       # (H, Tk, dh)
    mask = m_ref[0][None, :, :]        # (1, TQ, 1)   f32

    # Q @ K^T with head as the batch dim: one MXU push sequence, no lane slicing.
    s = lax.dot_general(q, k, (((2,), (2,)), ((0,), (0,))),
                        preferred_element_type=jnp.float32) * scale      # (H, TQ, Tk)
    score_ref[...] = (s * mask)[:, None].astype(score_ref.dtype)         # full-block store

    # Numerically-stable softmax over the UNMASKED scores (matches reference).
    smax = jnp.max(s, axis=-1, keepdims=True)
    e = jnp.exp(s - smax)
    denom = jnp.sum(e, axis=-1, keepdims=True)
    p = e * pl.reciprocal(denom, approx=approx_recip)
    p = p * mask                                    # query mask; Dropout(p=0) is identity

    # probs @ V, head-batched; accumulate in f32.
    o = lax.dot_general(p.astype(v.dtype), v, (((2,), (1,)), ((0,), (0,))),
                        preferred_element_type=jnp.float32)              # (H, TQ, dh)
    out_ref[0] = o.astype(out_ref.dtype)


def _attn_score_kernel(q_ref, k_ref, m_ref, score_ref, *, scale):
    # last_layer=True path: masked scaled scores only (no softmax / no V).
    q = q_ref[0]
    k = k_ref[0]
    mask = m_ref[0][None, :, :]
    s = lax.dot_general(q, k, (((2,), (2,)), ((0,), (0,))),
                        preferred_element_type=jnp.float32) * scale
    score_ref[...] = (s * mask)[:, None].astype(score_ref.dtype)


def mha_attention(Qh, Kh, Vh, qmask, *, scale, q_block=128, out_dtype=jnp.float32,
                  score_dtype=jnp.float32, approx_recip=True, vmem_limit_bytes=None):
    """Qh/Kh/Vh: (B, H, T, dh) head-split projections; qmask: (B, Tq, 1) f32."""
    B, H, Tq, dh = Qh.shape
    Tk = Kh.shape[2]
    TQ = Tq if Tq <= q_block else q_block
    grid = (B, pl.cdiv(Tq, TQ))        # qi innermost -> K/V block reused across q tiles
    kernel = functools.partial(_attn_fwd_kernel, scale=scale, approx_recip=approx_recip)

    out, score = pl.pallas_call(
        kernel,
        grid=grid,
        in_specs=[
            pl.BlockSpec((1, H, TQ, dh), lambda b, qi: (b, 0, qi, 0)),
            pl.BlockSpec((1, H, Tk, dh), lambda b, qi: (b, 0, 0, 0)),
            pl.BlockSpec((1, H, Tk, dh), lambda b, qi: (b, 0, 0, 0)),
            pl.BlockSpec((1, TQ, 1), lambda b, qi: (b, qi, 0)),
        ],
        out_specs=(
            pl.BlockSpec((1, H, TQ, dh), lambda b, qi: (b, 0, qi, 0)),
            pl.BlockSpec((H, 1, TQ, Tk), lambda b, qi: (0, b, qi, 0)),
        ),
        out_shape=(
            jax.ShapeDtypeStruct((B, H, Tq, dh), out_dtype),
            jax.ShapeDtypeStruct((H, B, Tq, Tk), score_dtype),
        ),
        compiler_params=pltpu.CompilerParams(
            dimension_semantics=("parallel", "parallel"),
            vmem_limit_bytes=vmem_limit_bytes),
    )(Qh, Kh, Vh, qmask)
    return out, score


def mha_scores_only(Qh, Kh, qmask, *, scale, q_block=128, score_dtype=jnp.float32,
                    vmem_limit_bytes=None):
    B, H, Tq, dh = Qh.shape
    Tk = Kh.shape[2]
    TQ = Tq if Tq <= q_block else q_block
    grid = (B, pl.cdiv(Tq, TQ))
    kernel = functools.partial(_attn_score_kernel, scale=scale)

    score = pl.pallas_call(
        kernel,
        grid=grid,
        in_specs=[
            pl.BlockSpec((1, H, TQ, dh), lambda b, qi: (b, 0, qi, 0)),
            pl.BlockSpec((1, H, Tk, dh), lambda b, qi: (b, 0, 0, 0)),
            pl.BlockSpec((1, TQ, 1), lambda b, qi: (b, qi, 0)),
        ],
        out_specs=pl.BlockSpec((H, 1, TQ, Tk), lambda b, qi: (0, b, qi, 0)),
        out_shape=jax.ShapeDtypeStruct((H, B, Tq, Tk), score_dtype),
        compiler_params=pltpu.CompilerParams(
            dimension_semantics=("parallel", "parallel"),
            vmem_limit_bytes=vmem_limit_bytes),
    )(Qh, Kh, qmask)
    return score


# ----------------------------------------------------------------------------
# Module forward (glue in plain JAX, hot paths in Pallas)
# ----------------------------------------------------------------------------
def _query_mask(queries):
    # query_masks = sign(abs(sum(queries, -1)))  -> (B, Tq, 1), f32 (from RAW queries)
    return jnp.sign(jnp.abs(jnp.sum(queries, axis=-1)))[:, :, None].astype(jnp.float32)


def _split_heads(x2, B, T, H, dh):
    # (B*T, D) -> (B, H, T, dh); head h == columns [h*dh:(h+1)*dh] (torch.chunk order).
    return x2.reshape(B, T, H, dh).transpose(0, 2, 1, 3)


def multi_head_attn(params, queries, keys, values, num_heads, last_layer=False,
                    compute_dtype=jnp.bfloat16, score_dtype=jnp.float32,
                    q_block=128, row_block=256, vmem_limit_bytes=None):
    # TODO(synk): 2-D input path (concat_dim==1 unsqueeze) not implemented; 3-D only.
    B, Tq, D = queries.shape
    _, Tk, _ = keys.shape
    assert D % num_heads == 0
    dh = D // num_heads
    scale = 1.0 / math.sqrt(dh)
    approx_recip = compute_dtype != jnp.float32   # exact division in f32-parity mode

    q2 = queries.reshape(B * Tq, D)
    k2 = keys.reshape(B * Tk, D)
    v2 = values.reshape(B * Tk, D)

    # Weights cast ONCE to the MXU compute dtype (halves weight DMA + resident VMEM).
    Wq = params["Wq"].astype(compute_dtype)
    Wk = params["Wk"].astype(compute_dtype)
    Wv = params["Wv"].astype(compute_dtype)
    bq, bk, bv = params["bq"], params["bk"], params["bv"]

    qmask = _query_mask(queries)

    if last_layer:
        # V projection / softmax / probs@V never affect the returned value -> skip.
        if Tq == Tk:
            Qp, Kp = fused_linear_relu([q2, k2], [Wq, Wk], [bq, bk], compute_dtype,
                                       row_block=row_block, vmem_limit_bytes=vmem_limit_bytes)
        else:
            (Qp,) = fused_linear_relu([q2], [Wq], [bq], compute_dtype,
                                      row_block=row_block, vmem_limit_bytes=vmem_limit_bytes)
            (Kp,) = fused_linear_relu([k2], [Wk], [bk], compute_dtype,
                                      row_block=row_block, vmem_limit_bytes=vmem_limit_bytes)
        Qh = _split_heads(Qp, B, Tq, num_heads, dh)
        Kh = _split_heads(Kp, B, Tk, num_heads, dh)
        score4 = mha_scores_only(Qh, Kh, qmask, scale=scale, q_block=q_block,
                                 score_dtype=score_dtype, vmem_limit_bytes=vmem_limit_bytes)
        return score4.reshape(num_heads * B, Tq, Tk)

    if Tq == Tk:
        Qp, Kp, Vp = fused_linear_relu([q2, k2, v2], [Wq, Wk, Wv], [bq, bk, bv], compute_dtype,
                                       row_block=row_block, vmem_limit_bytes=vmem_limit_bytes)
    else:
        (Qp,) = fused_linear_relu([q2], [Wq], [bq], compute_dtype,
                                  row_block=row_block, vmem_limit_bytes=vmem_limit_bytes)
        Kp, Vp = fused_linear_relu([k2, v2], [Wk, Wv], [bk, bv], compute_dtype,
                                   row_block=row_block, vmem_limit_bytes=vmem_limit_bytes)
    Qh = _split_heads(Qp, B, Tq, num_heads, dh)
    Kh = _split_heads(Kp, B, Tk, num_heads, dh)
    Vh = _split_heads(Vp, B, Tk, num_heads, dh)

    out4, score4 = mha_attention(Qh, Kh, Vh, qmask, scale=scale, q_block=q_block,
                                 out_dtype=jnp.float32, score_dtype=score_dtype,
                                 approx_recip=approx_recip, vmem_limit_bytes=vmem_limit_bytes)
    # out4 is (B, H, Tq, dh); torch's final chunk/cat == (B, Tq, H*dh) with head h at
    # columns [h*dh:(h+1)*dh].  score4 is (H, B, Tq, Tk); torch row order is h*B+b.
    out = out4.transpose(0, 2, 1, 3).reshape(B, Tq, D)
    return out, score4.reshape(num_heads * B, Tq, Tk)


# ----------------------------------------------------------------------------
if __name__ == "__main__":
    B, T, D, H = 2, 8, 32, 2  # batch, seq, num_units, num_heads

    key = jax.random.PRNGKey(0)
    kq_in, kk_in, kv_in, kwq, kwk, kwv = jax.random.split(key, 6)

    queries = jax.random.normal(kq_in, (B, T, D), jnp.float32)
    keys_in = jax.random.normal(kk_in, (B, T, D), jnp.float32)
    values_in = jax.random.normal(kv_in, (B, T, D), jnp.float32)

    # Deterministic parameter init (shapes from nn.Linear(num_units, num_units))
    scale_w = 1.0 / math.sqrt(D)
    params = {
        "Wq": jax.random.normal(kwq, (D, D), jnp.float32) * scale_w,
        "Wk": jax.random.normal(kwk, (D, D), jnp.float32) * scale_w,
        "Wv": jax.random.normal(kwv, (D, D), jnp.float32) * scale_w,
        "bq": jnp.zeros((1, D), jnp.float32),
        "bk": jnp.zeros((1, D), jnp.float32),
        "bv": jnp.zeros((1, D), jnp.float32),
    }

    outputs, attn_score = multi_head_attn(params, queries, keys_in, values_in, H)
    last_scores = multi_head_attn(params, queries, keys_in, values_in, H, last_layer=True)
    jax.block_until_ready((outputs, attn_score, last_scores))

    assert outputs.shape == (B, T, D)
    assert attn_score.shape == (H * B, T, T)
    assert last_scores.shape == (H * B, T, T)
    print("KERNEL_OK")
</pallas_src>

<mosaic_0001>
module attributes {stable_mosaic.version = 11 : i64} {
  func.func @_proj_relu_kernel(%arg0: i32, %arg1: memref<16x32xf32, #tpu.memory_space<vmem>>, %arg2: memref<16x32xf32, #tpu.memory_space<vmem>>, %arg3: memref<16x32xf32, #tpu.memory_space<vmem>>, %arg4: memref<32x32xbf16, #tpu.memory_space<vmem>>, %arg5: memref<32x32xbf16, #tpu.memory_space<vmem>>, %arg6: memref<32x32xbf16, #tpu.memory_space<vmem>>, %arg7: memref<1x32xf32, #tpu.memory_space<vmem>>, %arg8: memref<1x32xf32, #tpu.memory_space<vmem>>, %arg9: memref<1x32xf32, #tpu.memory_space<vmem>>, %arg10: memref<16x32xbf16, #tpu.memory_space<vmem>>, %arg11: memref<16x32xbf16, #tpu.memory_space<vmem>>, %arg12: memref<16x32xbf16, #tpu.memory_space<vmem>>) attributes {dimension_semantics = [#tpu.dimension_semantics<parallel>], iteration_bounds = array<i64: 1>, scalar_prefetch = 0 : i64, scratch_operands = 0 : i64, tpu.core_type = #tpu.core_type<tc>, window_params = [{transform_indices = @transform_0, window_bounds = array<i64: 16, 32>}, {transform_indices = @transform_1, window_bounds = array<i64: 16, 32>}, {transform_indices = @transform_2, window_bounds = array<i64: 16, 32>}, {pipeline_mode = #tpu.pipeline_mode<synchronous>, transform_indices = @transform_3, window_bounds = array<i64: 32, 32>}, {pipeline_mode = #tpu.pipeline_mode<synchronous>, transform_indices = @transform_4, window_bounds = array<i64: 32, 32>}, {pipeline_mode = #tpu.pipeline_mode<synchronous>, transform_indices = @transform_5, window_bounds = array<i64: 32, 32>}, {pipeline_mode = #tpu.pipeline_mode<synchronous>, transform_indices = @transform_6, window_bounds = array<i64: 1, 32>}, {pipeline_mode = #tpu.pipeline_mode<synchronous>, transform_indices = @transform_7, window_bounds = array<i64: 1, 32>}, {pipeline_mode = #tpu.pipeline_mode<synchronous>, transform_indices = @transform_8, window_bounds = array<i64: 1, 32>}, {transform_indices = @transform_9, window_bounds = array<i64: 16, 32>}, {transform_indices = @transform_10, window_bounds = array<i64: 16, 32>}, {transform_indices = @transform_11, window_bounds = array<i64: 16, 32>}]} {
    %c0 = arith.constant 0 : index
    %c0_0 = arith.constant 0 : index
    %0 = vector.load %arg1[%c0, %c0_0] : memref<16x32xf32, #tpu.memory_space<vmem>>, vector<16x32xf32>
    %1 = arith.truncf %0 : vector<16x32xf32> to vector<16x32xbf16>
    %c0_1 = arith.constant 0 : index
    %c0_2 = arith.constant 0 : index
    %2 = vector.load %arg4[%c0_1, %c0_2] : memref<32x32xbf16, #tpu.memory_space<vmem>>, vector<32x32xbf16>
    %cst = arith.constant dense<0.000000e+00> : vector<16x32xf32>
    %3 = tpu.matmul %1, %2, %cst {dimension_numbers = #tpu.dot_dimension_numbers<[1], [0], [0], [1], [0, 0, 1, 1], [], []>} : vector<16x32xbf16>, vector<32x32xbf16>, vector<16x32xf32> -> vector<16x32xf32>
    %c0_3 = arith.constant 0 : index
    %c0_4 = arith.constant 0 : index
    %4 = vector.load %arg7[%c0_3, %c0_4] : memref<1x32xf32, #tpu.memory_space<vmem>>, vector<1x32xf32>
    %5 = vector.broadcast %4 : vector<1x32xf32> to vector<16x32xf32>
    %6 = arith.addf %3, %5 : vector<16x32xf32>
    %cst_5 = arith.constant 0.000000e+00 : f32
    %7 = vector.broadcast %cst_5 : f32 to vector<16x32xf32>
    %8 = arith.maximumf %6, %7 : vector<16x32xf32>
    %9 = arith.truncf %8 : vector<16x32xf32> to vector<16x32xbf16>
    %c0_6 = arith.constant 0 : index
    %c0_7 = arith.constant 0 : index
    %10 = vector.load %arg10[%c0_6, %c0_7] : memref<16x32xbf16, #tpu.memory_space<vmem>>, vector<16x32xbf16>
    tpu.vector_store %arg10[%c0_6, %c0_7], %9 {strides = array<i32>} : memref<16x32xbf16, #tpu.memory_space<vmem>>, vector<16x32xbf16>,
    %c0_8 = arith.constant 0 : index
    %c0_9 = arith.constant 0 : index
    %11 = vector.load %arg2[%c0_8, %c0_9] : memref<16x32xf32, #tpu.memory_space<vmem>>, vector<16x32xf32>
    %12 = arith.truncf %11 : vector<16x32xf32> to vector<16x32xbf16>
    %c0_10 = arith.constant 0 : index
    %c0_11 = arith.constant 0 : index
    %13 = vector.load %arg5[%c0_10, %c0_11] : memref<32x32xbf16, #tpu.memory_space<vmem>>, vector<32x32xbf16>
    %cst_12 = arith.constant dense<0.000000e+00> : vector<16x32xf32>
    %14 = tpu.matmul %12, %13, %cst_12 {dimension_numbers = #tpu.dot_dimension_numbers<[1], [0], [0], [1], [0, 0, 1, 1], [], []>} : vector<16x32xbf16>, vector<32x32xbf16>, vector<16x32xf32> -> vector<16x32xf32>
    %c0_13 = arith.constant 0 : index
    %c0_14 = arith.constant 0 : index
    %15 = vector.load %arg8[%c0_13, %c0_14] : memref<1x32xf32, #tpu.memory_space<vmem>>, vector<1x32xf32>
    %16 = vector.broadcast %15 : vector<1x32xf32> to vector<16x32xf32>
    %17 = arith.addf %14, %16 : vector<16x32xf32>
    %cst_15 = arith.constant 0.000000e+00 : f32
    %18 = vector.broadcast %cst_15 : f32 to vector<16x32xf32>
    %19 = arith.maximumf %17, %18 : vector<16x32xf32>
    %20 = arith.truncf %19 : vector<16x32xf32> to vector<16x32xbf16>
    %c0_16 = arith.constant 0 : index
    %c0_17 = arith.constant 0 : index
    %21 = vector.load %arg11[%c0_16, %c0_17] : memref<16x32xbf16, #tpu.memory_space<vmem>>, vector<16x32xbf16>
    tpu.vector_store %arg11[%c0_16, %c0_17], %20 {strides = array<i32>} : memref<16x32xbf16, #tpu.memory_space<vmem>>, vector<16x32xbf16>,
    %c0_18 = arith.constant 0 : index
    %c0_19 = arith.constant 0 : index
    %22 = vector.load %arg3[%c0_18, %c0_19] : memref<16x32xf32, #tpu.memory_space<vmem>>, vector<16x32xf32>
    %23 = arith.truncf %22 : vector<16x32xf32> to vector<16x32xbf16>
    %c0_20 = arith.constant 0 : index
    %c0_21 = arith.constant 0 : index
    %24 = vector.load %arg6[%c0_20, %c0_21] : memref<32x32xbf16, #tpu.memory_space<vmem>>, vector<32x32xbf16>
    %cst_22 = arith.constant dense<0.000000e+00> : vector<16x32xf32>
    %25 = tpu.matmul %23, %24, %cst_22 {dimension_numbers = #tpu.dot_dimension_numbers<[1], [0], [0], [1], [0, 0, 1, 1], [], []>} : vector<16x32xbf16>, vector<32x32xbf16>, vector<16x32xf32> -> vector<16x32xf32>
    %c0_23 = arith.constant 0 : index
    %c0_24 = arith.constant 0 : index
    %26 = vector.load %arg9[%c0_23, %c0_24] : memref<1x32xf32, #tpu.memory_space<vmem>>, vector<1x32xf32>
    %27 = vector.broadcast %26 : vector<1x32xf32> to vector<16x32xf32>
    %28 = arith.addf %25, %27 : vector<16x32xf32>
    %cst_25 = arith.constant 0.000000e+00 : f32
    %29 = vector.broadcast %cst_25 : f32 to vector<16x32xf32>
    %30 = arith.maximumf %28, %29 : vector<16x32xf32>
    %31 = arith.truncf %30 : vector<16x32xf32> to vector<16x32xbf16>
    %c0_26 = arith.constant 0 : index
    %c0_27 = arith.constant 0 : index
    %32 = vector.load %arg12[%c0_26, %c0_27] : memref<16x32xbf16, #tpu.memory_space<vmem>>, vector<16x32xbf16>
    tpu.vector_store %arg12[%c0_26, %c0_27], %31 {strides = array<i32>} : memref<16x32xbf16, #tpu.memory_space<vmem>>, vector<16x32xbf16>,
    return
  }
  func.func @transform_0(%arg0: i32) -> (i32, i32) {
    %c0_i32 = arith.constant 0 : i32
    %c0_i32_0 = arith.constant 0 : i32
    return %arg0, %c0_i32 : i32, i32
  }
  func.func @transform_1(%arg0: i32) -> (i32, i32) {
    %c0_i32 = arith.constant 0 : i32
    %c0_i32_0 = arith.constant 0 : i32
    return %arg0, %c0_i32 : i32, i32
  }
  func.func @transform_2(%arg0: i32) -> (i32, i32) {
    %c0_i32 = arith.constant 0 : i32
    %c0_i32_0 = arith.constant 0 : i32
    return %arg0, %c0_i32 : i32, i32
  }
  func.func @transform_3(%arg0: i32) -> (i32, i32) {
    %c0_i32 = arith.constant 0 : i32
    %c0_i32_0 = arith.constant 0 : i32
    %c0_i32_1 = arith.constant 0 : i32
    return %c0_i32, %c0_i32_0 : i32, i32
  }
  func.func @transform_4(%arg0: i32) -> (i32, i32) {
    %c0_i32 = arith.constant 0 : i32
    %c0_i32_0 = arith.constant 0 : i32
    %c0_i32_1 = arith.constant 0 : i32
    return %c0_i32, %c0_i32_0 : i32, i32
  }
  func.func @transform_5(%arg0: i32) -> (i32, i32) {
    %c0_i32 = arith.constant 0 : i32
    %c0_i32_0 = arith.constant 0 : i32
    %c0_i32_1 = arith.constant 0 : i32
    return %c0_i32, %c0_i32_0 : i32, i32
  }
  func.func @transform_6(%arg0: i32) -> (i32, i32) {
    %c0_i32 = arith.constant 0 : i32
    %c0_i32_0 = arith.constant 0 : i32
    %c0_i32_1 = arith.constant 0 : i32
    return %c0_i32, %c0_i32_0 : i32, i32
  }
  func.func @transform_7(%arg0: i32) -> (i32, i32) {
    %c0_i32 = arith.constant 0 : i32
    %c0_i32_0 = arith.constant 0 : i32
    %c0_i32_1 = arith.constant 0 : i32
    return %c0_i32, %c0_i32_0 : i32, i32
  }
  func.func @transform_8(%arg0: i32) -> (i32, i32) {
    %c0_i32 = arith.constant 0 : i32
    %c0_i32_0 = arith.constant 0 : i32
    %c0_i32_1 = arith.constant 0 : i32
    return %c0_i32, %c0_i32_0 : i32, i32
  }
  func.func @transform_9(%arg0: i32) -> (i32, i32) {
    %c0_i32 = arith.constant 0 : i32
    %c0_i32_0 = arith.constant 0 : i32
    return %arg0, %c0_i32 : i32, i32
  }
  func.func @transform_10(%arg0: i32) -> (i32, i32) {
    %c0_i32 = arith.constant 0 : i32
    %c0_i32_0 = arith.constant 0 : i32
    return %arg0, %c0_i32 : i32, i32
  }
  func.func @transform_11(%arg0: i32) -> (i32, i32) {
    %c0_i32 = arith.constant 0 : i32
    %c0_i32_0 = arith.constant 0 : i32
    return %arg0, %c0_i32 : i32, i32
  }
}

</mosaic_0001>

<bundles_post_ra>
// kernel: tpu_custom_call.1
= control target key start
LH: loop header
LB: loop body
LE: loop exit
PB: predicated region body
PF: predicated region fallthrough
CT: control target
= control target key end

     0   :  { %17 = vsyncpa [#allocation3], 0  ;;  %s906_s0 = inlined_call_operand.hbm [shape: f32[16,32], index: 0, kind: input, shape index: {}]   ;;  %s907_s1 = inlined_call_operand.hbm [shape: f32[16,32], index: 1, kind: input, shape index: {}]   ;;  %s908_s2 = inlined_call_operand.hbm [shape: f32[16,32], index: 2, kind: input, shape index: {}]   ;;  %s909_s3 = inlined_call_operand.hbm [shape: bf16[32,32], index: 3, kind: input, shape index: {}]   ;;  %s910_s4 = inlined_call_operand.hbm [shape: bf16[32,32], index: 4, kind: input, shape index: {}]   ;;  %s911_s5 = inlined_call_operand.vmem [shape: bf16[32,32], index: 5, kind: input, shape index: {}]   ;;  %s912_s6 = inlined_call_operand.vmem [shape: f32[1,32], index: 6, kind: input, shape index: {}]   ;;  %s913_s7 = inlined_call_operand.vmem [shape: f32[1,32], index: 7, kind: input, shape index: {}]   ;;  %s914_s8 = inlined_call_operand.vmem [shape: f32[1,32], index: 8, kind: input, shape index: {}]   ;;  %s915_s9 = inlined_call_operand.hbm [shape: bf16[16,32], index: 9, kind: output, shape index: {0}]   ;;  %s916_s10 = inlined_call_operand.hbm [shape: bf16[16,32], index: 10, kind: output, shape index: {1}]   ;;  %s917_s11 = inlined_call_operand.hbm [shape: bf16[16,32], index: 11, kind: output, shape index: {2}]  }
   0x1   :  { %18 = vsyncpa [#allocation6], 0 }
   0x2   :  { %19 = vsyncpa [#allocation9], 0 }
   0x3   :  { %20 = vsyncpa [#allocation4], 0 }
   0x4   :  { %21 = vsyncpa [#allocation13], 0  ;;  %s667_s17 = smov [#allocation5]   ;;  %s668_s19 = smov [#allocation8]  }
   0x5   :  { %s39_s18 = sshll.u32 %s667_s17, 4  ;;  %s63_s20 = sshll.u32 %s668_s19, 4  ;;  %s40_s18 = int_to_ptr.vmem [resolvable:$true] %s39_s18  ;;  %s741_s20 = int_to_ptr.vmem [resolvable:$true] %s63_s20 }
   0x6   :  { %s481_s23 = scalar_lea.hbm %s907_s1, 256 }
   0x7   :  { %p482_p0 = scmp.ne.s32.totalorder %s907_s1, %s481_s23  ;;  %p485_p1 = scmp.lt.u32.totalorder %s481_s23, %s907_s1 }
   0x9   :  { %p487_p2 = pnand %p485_p1, %p482_p0 }
   0xb   :  { %490 = shalt.err (!%p487_p2)
}
   0xc   :  { %s491_s28 = scalar_lea.vmem %s40_s18, 256  ;;  %p496_p4 = scmp.lt.s32.totalorder %s40_s18, %s40_s18 }
   0xd   :  { %p492_p3 = scmp.ne.s32.totalorder %s40_s18, %s491_s28  ;;  %p497_p5 = scmp.lt.s32.totalorder %s491_s28, %s491_s28 }
   0xf   :  { %p498_p6 = por %p497_p5, %p496_p4 }
  0x11   :  { %p499_p7 = pnand %p498_p6, %p492_p3 }
  0x13   :  { %502 = shalt.err (!%p499_p7)
}
  0x14   :  { %s669_s29 = smov 128   ;;  %s670_s30 = smov 8  }
  0x15   :  { %45 = dma.hbm_to_vmem [thread:$0]  %s907_s1, 256, %s40_s18, [#allocation6], %s669_s29, %s669_s29, %s670_s30  }
  0x16   :  { %s503_s16 = scalar_lea.hbm %s909_s3, 256 }
  0x17   :  { %p504_p8 = scmp.ne.s32.totalorder %s909_s3, %s503_s16  ;;  %p507_p9 = scmp.lt.u32.totalorder %s503_s16, %s909_s3 }
  0x19   :  { %p509_p10 = pnand %p507_p9, %p504_p8 }
  0x1b   :  { %512 = shalt.err (!%p509_p10)
}
  0x1c   :  { %s513_s23 = scalar_lea.vmem %s741_s20, 256  ;;  %p518_p12 = scmp.lt.s32.totalorder %s741_s20, %s741_s20 }
  0x1d   :  { %p514_p11 = scmp.ne.s32.totalorder %s741_s20, %s513_s23  ;;  %p519_p13 = scmp.lt.s32.totalorder %s513_s23, %s513_s23 }
  0x1f   :  { %p520_p0 = por %p519_p13, %p518_p12 }
  0x21   :  { %p521_p1 = pnand %p520_p0, %p514_p11 }
  0x23   :  { %524 = shalt.err (!%p521_p1)
}
  0x24   :  { %s671_s1 = smov 64   ;;  %s672_s18 = smov 4  }
  0x25   :  { %69 = dma.hbm_to_vmem [thread:$0]  %s909_s3, 256, %s741_s20, [#allocation9], %s671_s1, %s671_s1, %s672_s18  }
  0x26   :  { %s673_s26 = smov [#allocation2]   ;;  %s674_s28 = smov [#allocation7]  }
  0x27   :  { %s27_s27 = sshll.u32 %s673_s26, 4  ;;  %s51_s12 = sshll.u32 %s674_s28, 4  ;;  %s28_s27 = int_to_ptr.vmem [resolvable:$true] %s27_s27  ;;  %s778_s12 = int_to_ptr.vmem [resolvable:$true] %s51_s12 }
  0x28   :  { %s525_s15 = scalar_lea.hbm %s906_s0, 256 }
  0x29   :  { %p526_p2 = scmp.ne.s32.totalorder %s906_s0, %s525_s15  ;;  %p529_p3 = scmp.lt.u32.totalorder %s525_s15, %s906_s0 }
  0x2b   :  { %p531_p4 = pnand %p529_p3, %p526_p2 }
  0x2d   :  { %534 = shalt.err (!%p531_p4)
}
  0x2e   :  { %s535_s3 = scalar_lea.vmem %s28_s27, 256  ;;  %p540_p6 = scmp.lt.s32.totalorder %s28_s27, %s28_s27 }
  0x2f   :  { %p536_p5 = scmp.ne.s32.totalorder %s28_s27, %s535_s3  ;;  %p541_p7 = scmp.lt.s32.totalorder %s535_s3, %s535_s3 }
  0x31   :  { %p542_p8 = por %p541_p7, %p540_p6 }
  0x33   :  { %p543_p9 = pnand %p542_p8, %p536_p5 }
  0x35   :  { %546 = shalt.err (!%p543_p9)
}
  0x36   :  { %33 = dma.hbm_to_vmem [thread:$0]  %s906_s0, 256, %s28_s27, [#allocation3], %s669_s29, %s669_s29, %s670_s30  }
  0x37   :  { %s547_s25 = scalar_lea.hbm %s908_s2, 256 }
  0x38   :  { %p548_p10 = scmp.ne.s32.totalorder %s908_s2, %s547_s25  ;;  %p551_p11 = scmp.lt.u32.totalorder %s547_s25, %s908_s2 }
  0x3a   :  { %p553_p12 = pnand %p551_p11, %p548_p10 }
  0x3c   :  { %556 = shalt.err (!%p553_p12)
}
  0x3d   :  { %s557_s15 = scalar_lea.vmem %s778_s12, 256  ;;  %p562_p0 = scmp.lt.s32.totalorder %s778_s12, %s778_s12 }
  0x3e   :  { %p558_p13 = scmp.ne.s32.totalorder %s778_s12, %s557_s15  ;;  %p563_p1 = scmp.lt.s32.totalorder %s557_s15, %s557_s15 }
  0x40   :  { %p564_p2 = por %p563_p1, %p562_p0 }
  0x42   :  { %p565_p3 = pnand %p564_p2, %p558_p13 }
  0x44   :  { %568 = shalt.err (!%p565_p3)
}
  0x45   :  { %57 = dma.hbm_to_vmem [thread:$0]  %s908_s2, 256, %s778_s12, [#allocation6], %s669_s29, %s669_s29, %s670_s30  }
  0x46   :  { %s675_s16 = smov [#allocation10]   ;;  %s569_s3 = scalar_lea.hbm %s910_s4, 256 }
  0x47   :  { %s75_s17 = sshll.u32 %s675_s16, 4  ;;  %p570_p4 = scmp.ne.s32.totalorder %s910_s4, %s569_s3  ;;  %s76_s17 = int_to_ptr.vmem [resolvable:$true] %s75_s17 }
  0x48   :  { %p573_p5 = scmp.lt.u32.totalorder %s569_s3, %s910_s4 }
  0x4a   :  { %p575_p6 = pnand %p573_p5, %p570_p4 }
  0x4c   :  { %578 = shalt.err (!%p575_p6)
}
  0x4d   :  { %s579_s25 = scalar_lea.vmem %s76_s17, 256  ;;  %p584_p8 = scmp.lt.s32.totalorder %s76_s17, %s76_s17 }
  0x4e   :  { %p580_p7 = scmp.ne.s32.totalorder %s76_s17, %s579_s25  ;;  %p585_p9 = scmp.lt.s32.totalorder %s579_s25, %s579_s25 }
  0x50   :  { %p586_p10 = por %p585_p9, %p584_p8 }
  0x52   :  { %p587_p11 = pnand %p586_p10, %p580_p7 }
  0x54   :  { %590 = shalt.err (!%p587_p11)
}
  0x55   :  { %81 = dma.hbm_to_vmem [thread:$0]  %s910_s4, 256, %s76_s17, [#allocation9], %s671_s1, %s671_s1, %s672_s18  }
  0x56   :  { %657 = dma.done.wait [#allocation3], 256  }
  0x57   :  { %658 = vsyncadd [#allocation3], 4294967040 }
  0x58   :  { %659 = dma.done.wait [#allocation6], 512  }
  0x59   :  { %660 = vsyncadd [#allocation6], 4294966784 }
  0x5a   :  { %661 = dma.done.wait [#allocation9], 512  }
  0x5b   :  { %662 = vsyncadd [#allocation9], 4294966784  ;;  %v676_v0 = vmov 0.0   ;;  %vm677_vm0 = vmmov 0   ;;  %v475_v1 = vld [vmem:[#allocation8] sm:$0xff]   ;;  %v476_v2 = vld [vmem:[#allocation8 + $0x8] sm:$0xff]  }
  0x5c   :  { %437 = vmatprep.subr.bf16.mxu0 %v676_v0  ;;  %445 = vmatprep.subr.bf16.mxu1 %v676_v0  ;;  %v477_v3 = vld [vmem:[#allocation10] sm:$0xff]   ;;  %v107_v5 = vld [vmem:[#allocation2 + $0x8] sm:$0xff]  ;;  %v190_v9 = vld [vmem:[#allocation5] sm:$0xff]  ;;  %vm132_vm1 = vcmask 261120   ;;  %vm187_vm2 = vcmask 257024   ;;  %s679_s27 = smov [#allocation12]  }
  0x5d   :  { %441 = vmatprep.mubr.msk.bf16.mxu0 %vm677_vm0, %v676_v0  ;;  %449 = vmatprep.mubr.msk.bf16.mxu1 %vm677_vm0, %v676_v0  ;;  %v106_v4 = vld [vmem:[#allocation2] sm:$0xff]  ;;  %v479_v8 = vld [vmem:[#allocation10 + $0x8] sm:$0xff]   ;;  %v191_v10 = vld [vmem:[#allocation5 + $0x8] sm:$0xff]  ;;  %s371_s16 = sshll.u32 %s679_s27, 4  ;;  %s850_s16 = int_to_ptr.vmem [resolvable:$true] %s371_s16 }
  0x5e   :  { %438 = vmatpush3.bf16.msra.mxu0 %v475_v1  ;;  %446 = vmatpush3.bf16.msra.mxu1 %v477_v3  ;;  %v478_v6 = vld [vmem:[%s911_s5] sm:$0xff]   ;;  %v108_v7 = vpack.c.bf16 %v107_v5, %v106_v4  ;;  %v192_v11 = vpack.c.bf16 %v191_v10, %v190_v9  ;;  %v480_v12 = vld [vmem:[%s911_s5 + $0x8] sm:$0xff]   ;;  %s678_s5 = smov [#allocation11]  }
  0x5f   :  { %439 = vmatprep.subr.bf16.mxu0 %v676_v0  ;;  %447 = vmatprep.subr.bf16.mxu1 %v676_v0  ;;  %v272_v13 = vld [vmem:[#allocation7] sm:$0xff]  ;;  %v273_v14 = vld [vmem:[#allocation7 + $0x8] sm:$0xff]  ;;  %s359_s0 = sshll.u32 %s678_s5, 4  ;;  %s360_s0 = int_to_ptr.vmem [resolvable:$true] %s359_s0 }
  0x60   :  { %v274_v15 = vpack.c.bf16 %v273_v14, %v272_v13  ;;  %v404_v16 = vld [vmem:[%s912_s6] ss:$0 sm:$0xff]  ;;  %p596_p13 = scmp.lt.s32.totalorder %s360_s0, %s360_s0 }
  0x61   :  { %v410_v18 = vld [vmem:[%s913_s7] ss:$0 sm:$0xff] }
  0x62   :  { %440 = vmatpush3.bf16.msra.mxu0 %v476_v2  ;;  %448 = vmatpush3.bf16.msra.mxu1 %v479_v8  ;;  %v416_v34 = vld [vmem:[%s914_s8] ss:$0 sm:$0xff]  ;;  %s591_s8 = scalar_lea.vmem %s360_s0, 128 }
  0x63   :  { %453 = vmatprep.subr.bf16.mxu0 %v676_v0  ;;  %p592_p12 = scmp.ne.s32.totalorder %s360_s0, %s591_s8  ;;  %p597_p0 = scmp.lt.s32.totalorder %s591_s8, %s591_s8 }
  0x65   :  { %442 = vmatmul.mubr.msk.bf16.vlgmr.msra.gmra.mrb[0].mxu0 %vm132_vm1, %v108_v7  ;;  %450 = vmatmul.mubr.msk.bf16.vlgmr.msra.gmra.mrb[0].mxu1 %vm132_vm1, %v192_v11  ;;  %p598_p1 = por %p597_p0, %p596_p13 }
  0x66   :  { %454 = vmatpush3.bf16.msra.mxu0 %v478_v6  ;;  %457 = vmatprep.mubr.msk.bf16.mxu0 %vm677_vm0, %v676_v0 }
  0x67   :  { %455 = vmatprep.subr.bf16.mxu0 %v676_v0  ;;  %p599_p2 = pnand %p598_p1, %p592_p12 }
  0x6a   :  { %456 = vmatpush3.bf16.msra.mxu0 %v480_v12 }
  0x6d   :  { %458 = vmatmul.mubr.msk.bf16.vlgmr.msra.gmra.mrb[4].mxu0 %vm132_vm1, %v274_v15 }
 0x138   :  { %v170_v17 = vpop.f32.mrb[0].mxu0  ;;  %v253_v22 = vpop.f32.mrb[0].mxu1 }
 0x139   :  { %v171_v19 = vadd.f32 %v404_v16, %v170_v17  ;;  %v443_v20 = vpop.f32.mrb[1].mxu0  ;;  %v254_v26 = vadd.f32 %v410_v18, %v253_v22  ;;  %v451_v27 = vpop.f32.mrb[1].mxu1 }
 0x13a   :  { %v173_v21 = vpop.f32.mrb[2].mxu0  ;;  %v256_v28 = vpop.f32.mrb[2].mxu1 }
 0x13b   :  { %v177_v23 = vmax.f32 %v171_v19, 0.0  ;;  %v174_v24 = vadd.f32 %v404_v16, %v173_v21  ;;  %v444_v25 = vpop.f32.mrb[3].mxu0  ;;  %v260_v31 = vmax.f32 %v254_v26, 0.0  ;;  %v257_v32 = vadd.f32 %v410_v18, %v256_v28  ;;  %v452_v33 = vpop.f32.mrb[3].mxu1 }
 0x13d   :  { %v422_v29 = vpack.c.bf16 %v177_v23, %v177_v23  ;;  %v178_v30 = vmax.f32 %v174_v24, 0.0  ;;  %v424_v36 = vpack.c.bf16 %v260_v31, %v260_v31  ;;  %v261_v37 = vmax.f32 %v257_v32, 0.0 }
 0x13f   :  { %v423_v35 = vpack.c.bf16 %v178_v30, %v178_v30  ;;  %188 = vst.msk [vmem:[#allocation11] sm:$0xf] %vm187_vm2, %v422_v29  ;;  %v425_v39 = vpack.c.bf16 %v261_v37, %v261_v37  ;;  %270 = vst.msk [vmem:[#allocation12] sm:$0xf] %vm187_vm2, %v424_v36 }
 0x140   :  { %v335_v38 = vpop.f32.mrb[4].mxu0 }
 0x141   :  { %v336_v40 = vadd.f32 %v416_v34, %v335_v38  ;;  %v459_v41 = vpop.f32.mrb[5].mxu0  ;;  %189 = vst.msk [vmem:[#allocation11 + $0x4] sm:$0xf] %vm187_vm2, %v423_v35 }
 0x142   :  { %v338_v42 = vpop.f32.mrb[6].mxu0 }
 0x143   :  { %602 = shalt.err (!%p599_p2)
}
 0x144   :  { %s603_s21 = scalar_lea.hbm %s915_s9, 128 }
 0x145   :  { %p604_p3 = scmp.ne.s32.totalorder %s915_s9, %s603_s21  ;;  %p607_p4 = scmp.lt.u32.totalorder %s603_s21, %s915_s9 }
 0x147   :  { %p609_p5 = pnand %p607_p4, %p604_p3 }
 0x149   :  { %612 = shalt.err (!%p609_p5)
}
 0x14a   :  { %365 = dma.vmem_to_hbm [thread:$0]  %s360_s0, 128, %s915_s9, [#allocation4], %s671_s1, %s671_s1, %s672_s18   ;;  %v342_v43 = vmax.f32 %v336_v40, 0.0  ;;  %v339_v44 = vadd.f32 %v416_v34, %v338_v42  ;;  %v460_v45 = vpop.f32.mrb[7].mxu0  ;;  %271 = vst.msk [vmem:[#allocation12 + $0x4] sm:$0xf] %vm187_vm2, %v425_v39 }
 0x14b   :  { %s680_s2 = smov [#allocation14]   ;;  %s613_s4 = scalar_lea.vmem %s850_s16, 128 }
 0x14c   :  { %s383_s29 = sshll.u32 %s680_s2, 4  ;;  %p614_p6 = scmp.ne.s32.totalorder %s850_s16, %s613_s4  ;;  %s384_s29 = int_to_ptr.vmem [resolvable:$true] %s383_s29 }
 0x14d   :  { %p618_p7 = scmp.lt.s32.totalorder %s850_s16, %s850_s16  ;;  %p619_p8 = scmp.lt.s32.totalorder %s613_s4, %s613_s4 }
 0x14f   :  { %p620_p9 = por %p619_p8, %p618_p7 }
 0x151   :  { %p621_p10 = pnand %p620_p9, %p614_p6 }
 0x153   :  { %624 = shalt.err (!%p621_p10)
}
 0x154   :  { %s625_s26 = scalar_lea.hbm %s916_s10, 128 }
 0x155   :  { %p626_p11 = scmp.ne.s32.totalorder %s916_s10, %s625_s26  ;;  %p629_p12 = scmp.lt.u32.totalorder %s625_s26, %s916_s10 }
 0x157   :  { %p631_p13 = pnand %p629_p12, %p626_p11 }
 0x159   :  { %634 = shalt.err (!%p631_p13)
}
 0x15a   :  { %377 = dma.vmem_to_hbm [thread:$0]  %s850_s16, 128, %s916_s10, [#allocation13], %s671_s1, %s671_s1, %s672_s18   ;;  %v426_v46 = vpack.c.bf16 %v342_v43, %v342_v43  ;;  %v343_v47 = vmax.f32 %v339_v44, 0.0 }
 0x15b   :  { %s635_s0 = scalar_lea.vmem %s384_s29, 128  ;;  %p640_p1 = scmp.lt.s32.totalorder %s384_s29, %s384_s29 }
 0x15c   :  { %v427_v48 = vpack.c.bf16 %v343_v47, %v343_v47  ;;  %352 = vst.msk [vmem:[#allocation14] sm:$0xf] %vm187_vm2, %v426_v46  ;;  %p636_p0 = scmp.ne.s32.totalorder %s384_s29, %s635_s0  ;;  %p641_p2 = scmp.lt.s32.totalorder %s635_s0, %s635_s0 }
 0x15e   :  { %353 = vst.msk [vmem:[#allocation14 + $0x4] sm:$0xf] %vm187_vm2, %v427_v48  ;;  %p642_p3 = por %p641_p2, %p640_p1 }
 0x160   :  { %p643_p4 = pnand %p642_p3, %p636_p0 }
 0x162   :  { %646 = shalt.err (!%p643_p4)
}
 0x163   :  { %s647_s27 = scalar_lea.hbm %s917_s11, 128 }
 0x164   :  { %p648_p5 = scmp.ne.s32.totalorder %s917_s11, %s647_s27  ;;  %p651_p6 = scmp.lt.u32.totalorder %s647_s27, %s917_s11 }
 0x166   :  { %p653_p7 = pnand %p651_p6, %p648_p5 }
 0x168   :  { %656 = shalt.err (!%p653_p7)
}
 0x169   :  { %389 = dma.vmem_to_hbm [thread:$0]  %s384_s29, 128, %s917_s11, [#allocation13], %s671_s1, %s671_s1, %s672_s18  }
 0x16a   :  { %663 = dma.done.wait [#allocation4], 128  }
 0x16b   :  { %664 = vsyncadd [#allocation4], 4294967168 }
 0x16c   :  { %665 = dma.done.wait [#allocation13], 256  }
 0x16d   :  { %666 = vsyncadd [#allocation13], 4294967040 }
 0x16e   :  { %399 = vsyncpa [#allocation3], 1 }
 0x16f   :  { %400 = vsyncpa [#allocation6], 1 }
 0x170   :  { %401 = vsyncpa [#allocation9], 1 }
 0x171   :  { %402 = vsyncpa [#allocation4], 1 }
 0x172   :  { %403 = vsyncpa [#allocation13], 1 }

</bundles_post_ra>
